<compile_context>
chip_gen: v6e
topology: v6e:2x2x1
jax: 0.10.0
libtpu: 0.0.40
codegen_flags: <defaults>
</compile_context>

<pallas_src>
import functools

import jax
import jax.numpy as jnp
from jax import lax
from jax.experimental import pallas as pl
from jax.experimental.pallas import tpu as pltpu


def _round_up(x, m):
    return (x + m - 1) // m * m


# ----------------------------------------------------------------------------
# Pallas kernel: fused Linear (x @ W + b) + online logsumexp over the vocab axis.
# Grid = (row tiles, vocab tiles); vocab axis is innermost ("arbitrary") so the
# running max / sum-of-exp scratch carries across it; row axis is "parallel".
# ----------------------------------------------------------------------------
def _linear_lse_kernel(x_ref, w_ref, b_ref, logits_ref, lse_ref, m_sc, l_sc,
                       *, v_true, tn_size):
    j = pl.program_id(1)

    @pl.when(j == 0)
    def _():
        m_sc[...] = jnp.full_like(m_sc, -jnp.inf)
        l_sc[...] = jnp.zeros_like(l_sc)

    # MXU matmul: bf16 operands, f32 accumulation; bias epilogue in f32.
    logits = jnp.dot(x_ref[...], w_ref[...],
                     preferred_element_type=jnp.float32) + b_ref[...]
    logits_ref[...] = logits.astype(logits_ref.dtype)

    # Mask padded vocab columns (beyond the true vocab size) out of the reduction.
    col = j * tn_size + lax.broadcasted_iota(jnp.int32, logits.shape, 1)
    masked = jnp.where(col < v_true, logits, jnp.float32(-1e30))

    # Online logsumexp update (flash-attention style).
    m_prev = m_sc[...]
    m_new = jnp.maximum(m_prev, jnp.max(masked, axis=-1, keepdims=True))
    l_sc[...] = (l_sc[...] * jnp.exp(m_prev - m_new)
                 + jnp.sum(jnp.exp(masked - m_new), axis=-1, keepdims=True))
    m_sc[...] = m_new

    @pl.when(j == pl.num_programs(1) - 1)
    def _():
        lse_ref[...] = m_sc[...] + jnp.log(l_sc[...])


def linear_lse(eouts, weight_t, bias, *, row_tile=256, vocab_tile=512):
    """eouts: (B, T, H) f32; weight_t: (H, V); bias: (V,).

    Returns (logits (B,T,V) f32, lse (B,T,1) f32) with lse = logsumexp(logits, -1).
    """
    B, T, H = eouts.shape
    V = weight_t.shape[1]
    M = B * T

    # Tile sizes: sublane multiple of 8, lane multiple of 128 (lane-dense stores).
    tm = min(_round_up(row_tile, 8), _round_up(M, 8))
    tn = min(_round_up(vocab_tile, 128), _round_up(V, 128))
    M_pad = _round_up(M, tm)
    V_pad = _round_up(V, tn)

    # Pad & cast operands.  bf16 on the MXU ~= full-rate path on v6e/v7x, 2x on v5e,
    # and halves weight/activation HBM read + VMEM footprint.
    x = eouts.reshape(M, H)
    x_pad = jnp.zeros((M_pad, H), jnp.bfloat16).at[:M].set(x.astype(jnp.bfloat16))
    w_pad = jnp.zeros((H, V_pad), jnp.bfloat16).at[:, :V].set(
        weight_t.astype(jnp.bfloat16))
    b_pad = jnp.zeros((1, V_pad), jnp.float32).at[:, :V].set(
        bias.astype(jnp.float32).reshape(1, V))

    grid = (M_pad // tm, V_pad // tn)

    # Explicit VMEM budget: 2 pipeline buffers per pipelined operand + scratch.
    vmem_need = 2 * (tm * H * 2 + H * tn * 2 + tn * 4 + tm * tn * 4 + tm * 4) + 2 * tm * 4
    vmem_limit = int(min(max(2 * vmem_need, 16 * 1024 * 1024), 48 * 1024 * 1024))

    kernel = functools.partial(_linear_lse_kernel, v_true=V, tn_size=tn)

    logits_pad, lse_pad = pl.pallas_call(
        kernel,
        out_shape=(
            jax.ShapeDtypeStruct((M_pad, V_pad), jnp.float32),
            jax.ShapeDtypeStruct((M_pad, 1), jnp.float32),
        ),
        grid_spec=pltpu.PrefetchScalarGridSpec(
            num_scalar_prefetch=0,
            grid=grid,
            in_specs=[
                pl.BlockSpec((tm, H), lambda i, j: (i, 0)),   # activations (bf16)
                pl.BlockSpec((H, tn), lambda i, j: (0, j)),   # weight tile (bf16)
                pl.BlockSpec((1, tn), lambda i, j: (0, j)),   # bias tile (f32)
            ],
            out_specs=[
                pl.BlockSpec((tm, tn), lambda i, j: (i, j)),  # logits tile (f32)
                pl.BlockSpec((tm, 1), lambda i, j: (i, 0)),   # lse, resident across j
            ],
            scratch_shapes=[
                pltpu.VMEM((tm, 1), jnp.float32),             # running max
                pltpu.VMEM((tm, 1), jnp.float32),             # running sum-of-exp
            ],
        ),
        compiler_params=pltpu.CompilerParams(
            dimension_semantics=("parallel", "arbitrary"),
            vmem_limit_bytes=vmem_limit,
        ),
    )(x_pad, w_pad, b_pad)

    logits = logits_pad[:M, :V].reshape(B, T, V)
    lse = lse_pad[:M].reshape(B, T, 1)
    return logits, lse


# ----------------------------------------------------------------------------
# CTC loss (forward algorithm), matching nn.CTCLoss(blank=blank_id,
# reduction='sum', zero_infinity=True).  Plain JAX (sequential DP over time).
# Uses log_probs[b,t,ext] = logits[b,t,ext] - lse[b,t] so the full (B,T,V)
# log_probs array is never materialized.
# TODO(synk): CTC alpha recursion kept in plain JAX lax.scan (sequential,
#             latency-bound DP — not a natural Pallas tile kernel at these sizes).
# ----------------------------------------------------------------------------
def ctc_loss_sum(logits, lse, ys, elens, ylens, blank_id):
    B, T, V = logits.shape
    L = ys.shape[1]
    S = 2 * L + 1
    neg = jnp.float32(-jnp.inf)

    # Blank-interleaved extended label sequence.  Padded label positions beyond
    # ylens flow into ext but are never read at the readout positions.
    ext = jnp.full((B, S), blank_id, dtype=jnp.int32)
    ext = ext.at[:, 1::2].set(ys.astype(jnp.int32))

    # Per-(b, t, s) emission log-probs via gather on logits minus the lse.
    emit = jnp.take_along_axis(logits, ext[:, None, :], axis=2) - lse   # (B, T, S)

    same_as_prev2 = jnp.concatenate(
        [jnp.ones((B, 2), dtype=bool), ext[:, 2:] == ext[:, :-2]], axis=1)
    is_blank = ext == blank_id
    allow_skip = jnp.logical_not(is_blank | same_as_prev2)              # (B, S)

    alpha0 = jnp.full((B, S), neg, dtype=jnp.float32)
    alpha0 = alpha0.at[:, 0].set(emit[:, 0, 0])
    alpha0 = alpha0.at[:, 1].set(jnp.where(ylens >= 1, emit[:, 0, 1], neg))

    def step(alpha, t):
        a0 = alpha
        a1 = jnp.concatenate([jnp.full((B, 1), neg), alpha[:, :-1]], axis=1)
        a2 = jnp.concatenate([jnp.full((B, 2), neg), alpha[:, :-2]], axis=1)
        a2 = jnp.where(allow_skip, a2, neg)
        m = jnp.maximum(jnp.maximum(a0, a1), a2)
        m_safe = jnp.where(jnp.isneginf(m), 0.0, m)
        s = jnp.exp(a0 - m_safe) + jnp.exp(a1 - m_safe) + jnp.exp(a2 - m_safe)
        new = jnp.where(jnp.isneginf(m), neg, m_safe + jnp.log(s)) + emit[:, t]
        valid = (t < elens)[:, None]
        return jnp.where(valid, new, alpha), None

    alpha, _ = lax.scan(step, alpha0, jnp.arange(1, T))

    # Readout at states 2*ylens and 2*ylens - 1 (the latter only if ylens >= 1).
    idx_last = 2 * ylens
    a_last = jnp.take_along_axis(alpha, idx_last[:, None], axis=1)[:, 0]
    idx_prev = jnp.maximum(idx_last - 1, 0)
    a_prev = jnp.take_along_axis(alpha, idx_prev[:, None], axis=1)[:, 0]
    a_prev = jnp.where(ylens >= 1, a_prev, neg)

    loss_b = -jnp.logaddexp(a_last, a_prev)
    # zero_infinity=True: infeasible alignments (-inf alphas) contribute zero loss.
    loss_b = jnp.where(jnp.isfinite(loss_b), loss_b, 0.0)
    return jnp.sum(loss_b)


# ----------------------------------------------------------------------------
# CTCDecoder forward (kd_weight=0, mtl_phone_ctc_weight=0, mtl_inter_ctc_weight=0)
# ----------------------------------------------------------------------------
def ctc_decoder_forward(weight_t, bias, blank_id, eouts, elens,
                        ys=None, ylens=None):
    logits, lse = linear_lse(eouts, weight_t, bias)
    if ys is None:
        return logits
    B = eouts.shape[0]
    loss_ctc = ctc_loss_sum(logits, lse, ys, elens, ylens, blank_id) / B
    loss = loss_ctc
    loss_dict = {"loss_ctc": loss_ctc, "loss_total": loss}
    return loss, loss_dict, logits


if __name__ == "__main__":
    # --- deterministic synthetic params / inputs --------------------------------
    B, T, H, V = 2, 8, 32, 16          # batch, enc frames, enc_hidden_size, vocab_size
    L = 4                              # max label length
    blank_id = 0

    key = jax.random.PRNGKey(0)
    k_w, k_b, k_x, k_y = jax.random.split(key, 4)

    # nn.Linear(enc_hidden_size, vocab_size): weight (V, H), bias (V,)
    weight = jax.random.normal(k_w, (V, H), dtype=jnp.float32) * 0.1
    bias = jax.random.normal(k_b, (V,), dtype=jnp.float32) * 0.01
    weight_t = weight.T                                # (H, V) for the kernel

    eouts = jax.random.normal(k_x, (B, T, H), dtype=jnp.float32)
    elens = jnp.array([8, 6], dtype=jnp.int32)
    ys = jax.random.randint(k_y, (B, L), 1, V, dtype=jnp.int32)   # labels != blank
    ylens = jnp.array([3, 4], dtype=jnp.int32)

    # --- sanity-check the fused kernel against a pure-JAX reference -------------
    logits_k, lse_k = linear_lse(eouts, weight_t, bias)
    jax.block_until_ready((logits_k, lse_k))
    ref_logits = jnp.einsum("bth,hv->btv", eouts, weight_t) + bias
    m = jnp.max(ref_logits, axis=-1, keepdims=True)
    ref_lse = jnp.log(jnp.sum(jnp.exp(ref_logits - m), axis=-1, keepdims=True)) + m
    assert logits_k.shape == (B, T, V) and lse_k.shape == (B, T, 1)
    assert float(jnp.max(jnp.abs(logits_k - ref_logits))) < 0.1   # bf16 MXU tolerance
    assert float(jnp.max(jnp.abs(lse_k - ref_lse))) < 0.1

    fwd = functools.partial(ctc_decoder_forward, weight_t, bias, blank_id)

    # inference path (ys is None): returns logits only
    logits_only = fwd(eouts, elens)
    jax.block_until_ready(logits_only)
    assert logits_only.shape == (B, T, V)

    # training path: (loss, loss_dict, logits)
    loss, loss_dict, logits = fwd(eouts, elens, ys, ylens)
    jax.block_until_ready((loss, logits))
    assert logits.shape == (B, T, V)
    assert bool(jnp.isfinite(loss))

    print("KERNEL_OK")
</pallas_src>

<mosaic_0001>
module attributes {stable_mosaic.version = 11 : i64} {
  func.func @_linear_lse_kernel(%arg0: i32, %arg1: i32, %arg2: memref<16x32xbf16, #tpu.memory_space<vmem>>, %arg3: memref<32x128xbf16, #tpu.memory_space<vmem>>, %arg4: memref<1x128xf32, #tpu.memory_space<vmem>>, %arg5: memref<16x128xf32, #tpu.memory_space<vmem>>, %arg6: memref<16x1xf32, #tpu.memory_space<vmem>>, %arg7: memref<16x1xf32, #tpu.memory_space<vmem>>, %arg8: memref<16x1xf32, #tpu.memory_space<vmem>>) attributes {dimension_semantics = [#tpu.dimension_semantics<parallel>, #tpu.dimension_semantics<arbitrary>], iteration_bounds = array<i64: 1, 1>, scalar_prefetch = 0 : i64, scratch_operands = 2 : i64, tpu.core_type = #tpu.core_type<tc>, window_params = [{transform_indices = @transform_0, window_bounds = array<i64: 16, 32>}, {transform_indices = @transform_1, window_bounds = array<i64: 32, 128>}, {transform_indices = @transform_2, window_bounds = array<i64: 1, 128>}, {transform_indices = @transform_3, window_bounds = array<i64: 16, 128>}, {transform_indices = @transform_4, window_bounds = array<i64: 16, 1>}]} {
    %c0_i32 = arith.constant 0 : i32
    %0 = arith.cmpi eq, %arg1, %c0_i32 : i32
    %1 = arith.extui %0 : i1 to i32
    %c0_i32_0 = arith.constant 0 : i32
    %2 = arith.cmpi ne, %1, %c0_i32_0 : i32
    scf.if %2 {
      %cst_21 = arith.constant 0xFF800000 : f32
      %37 = vector.broadcast %cst_21 : f32 to vector<16x1xf32>
      %c0_22 = arith.constant 0 : index
      %c0_23 = arith.constant 0 : index
      %38 = vector.load %arg7[%c0_22, %c0_23] : memref<16x1xf32, #tpu.memory_space<vmem>>, vector<16x1xf32>
      tpu.vector_store %arg7[%c0_22, %c0_23], %37 {strides = array<i32>} : memref<16x1xf32, #tpu.memory_space<vmem>>, vector<16x1xf32>,
      %cst_24 = arith.constant 0.000000e+00 : f32
      %39 = vector.broadcast %cst_24 : f32 to vector<16x1xf32>
      %c0_25 = arith.constant 0 : index
      %c0_26 = arith.constant 0 : index
      %40 = vector.load %arg8[%c0_25, %c0_26] : memref<16x1xf32, #tpu.memory_space<vmem>>, vector<16x1xf32>
      tpu.vector_store %arg8[%c0_25, %c0_26], %39 {strides = array<i32>} : memref<16x1xf32, #tpu.memory_space<vmem>>, vector<16x1xf32>,
    } else {
    }
    %c0 = arith.constant 0 : index
    %c0_1 = arith.constant 0 : index
    %3 = vector.load %arg2[%c0, %c0_1] : memref<16x32xbf16, #tpu.memory_space<vmem>>, vector<16x32xbf16>
    %c0_2 = arith.constant 0 : index
    %c0_3 = arith.constant 0 : index
    %4 = vector.load %arg3[%c0_2, %c0_3] : memref<32x128xbf16, #tpu.memory_space<vmem>>, vector<32x128xbf16>
    %cst = arith.constant dense<0.000000e+00> : vector<16x128xf32>
    %5 = tpu.matmul %3, %4, %cst {dimension_numbers = #tpu.dot_dimension_numbers<[1], [0], [0], [1], [0, 0, 1, 1], [], []>} : vector<16x32xbf16>, vector<32x128xbf16>, vector<16x128xf32> -> vector<16x128xf32>
    %c0_4 = arith.constant 0 : index
    %c0_5 = arith.constant 0 : index
    %6 = vector.load %arg4[%c0_4, %c0_5] : memref<1x128xf32, #tpu.memory_space<vmem>>, vector<1x128xf32>
    %7 = vector.broadcast %6 : vector<1x128xf32> to vector<16x128xf32>
    %8 = arith.addf %5, %7 : vector<16x128xf32>
    %c0_6 = arith.constant 0 : index
    %c0_7 = arith.constant 0 : index
    %9 = vector.load %arg5[%c0_6, %c0_7] : memref<16x128xf32, #tpu.memory_space<vmem>>, vector<16x128xf32>
    tpu.vector_store %arg5[%c0_6, %c0_7], %8 {strides = array<i32>} : memref<16x128xf32, #tpu.memory_space<vmem>>, vector<16x128xf32>,
    %c128_i32 = arith.constant 128 : i32
    %10 = arith.muli %arg1, %c128_i32 : i32
    %11 = tpu.iota {dimensions = array<i32: 1>} : vector<16x128xi32>
    %12 = vector.broadcast %10 : i32 to vector<16x128xi32>
    %13 = arith.addi %12, %11 : vector<16x128xi32>
    %c16_i32 = arith.constant 16 : i32
    %14 = vector.broadcast %c16_i32 : i32 to vector<16x128xi32>
    %15 = arith.cmpi slt, %13, %14 : vector<16x128xi32>
    %cst_8 = arith.constant -1.000000e+30 : f32
    %16 = vector.broadcast %cst_8 : f32 to vector<16x128xf32>
    %17 = arith.select %15, %8, %16 : vector<16x128xi1>, vector<16x128xf32>
    %c0_9 = arith.constant 0 : index
    %c0_10 = arith.constant 0 : index
    %18 = vector.load %arg7[%c0_9, %c0_10] : memref<16x1xf32, #tpu.memory_space<vmem>>, vector<16x1xf32>
    %cst_11 = arith.constant dense<0xFF800000> : vector<16xf32>
    %19 = vector.multi_reduction <maximumf>, %17, %cst_11 [1] : vector<16x128xf32> to vector<16xf32>
    %20 = vector.shape_cast %19 : vector<16xf32> to vector<16x1xf32>
    %21 = arith.maximumf %18, %20 : vector<16x1xf32>
    %c0_12 = arith.constant 0 : index
    %c0_13 = arith.constant 0 : index
    %22 = vector.load %arg8[%c0_12, %c0_13] : memref<16x1xf32, #tpu.memory_space<vmem>>, vector<16x1xf32>
    %23 = arith.subf %18, %21 : vector<16x1xf32>
    %24 = math.exp %23 : vector<16x1xf32>
    %25 = arith.mulf %22, %24 : vector<16x1xf32>
    %26 = vector.broadcast %21 : vector<16x1xf32> to vector<16x128xf32>
    %27 = arith.subf %17, %26 : vector<16x128xf32>
    %28 = math.exp %27 : vector<16x128xf32>
    %cst_14 = arith.constant dense<0.000000e+00> : vector<16xf32>
    %29 = vector.multi_reduction <add>, %28, %cst_14 [1] : vector<16x128xf32> to vector<16xf32>
    %30 = vector.shape_cast %29 : vector<16xf32> to vector<16x1xf32>
    %31 = arith.addf %25, %30 : vector<16x1xf32>
    %c0_15 = arith.constant 0 : index
    %c0_16 = arith.constant 0 : index
    %32 = vector.load %arg8[%c0_15, %c0_16] : memref<16x1xf32, #tpu.memory_space<vmem>>, vector<16x1xf32>
    tpu.vector_store %arg8[%c0_15, %c0_16], %31 {strides = array<i32>} : memref<16x1xf32, #tpu.memory_space<vmem>>, vector<16x1xf32>,
    %c0_17 = arith.constant 0 : index
    %c0_18 = arith.constant 0 : index
    %33 = vector.load %arg7[%c0_17, %c0_18] : memref<16x1xf32, #tpu.memory_space<vmem>>, vector<16x1xf32>
    tpu.vector_store %arg7[%c0_17, %c0_18], %21 {strides = array<i32>} : memref<16x1xf32, #tpu.memory_space<vmem>>, vector<16x1xf32>,
    %c0_i32_19 = arith.constant 0 : i32
    %34 = arith.cmpi eq, %arg1, %c0_i32_19 : i32
    %35 = arith.extui %34 : i1 to i32
    %c0_i32_20 = arith.constant 0 : i32
    %36 = arith.cmpi ne, %35, %c0_i32_20 : i32
    scf.if %36 {
      %c0_21 = arith.constant 0 : index
      %c0_22 = arith.constant 0 : index
      %37 = vector.load %arg7[%c0_21, %c0_22] : memref<16x1xf32, #tpu.memory_space<vmem>>, vector<16x1xf32>
      %c0_23 = arith.constant 0 : index
      %c0_24 = arith.constant 0 : index
      %38 = vector.load %arg8[%c0_23, %c0_24] : memref<16x1xf32, #tpu.memory_space<vmem>>, vector<16x1xf32>
      %39 = math.log %38 : vector<16x1xf32>
      %40 = arith.addf %37, %39 : vector<16x1xf32>
      %c0_25 = arith.constant 0 : index
      %c0_26 = arith.constant 0 : index
      %41 = vector.load %arg6[%c0_25, %c0_26] : memref<16x1xf32, #tpu.memory_space<vmem>>, vector<16x1xf32>
      tpu.vector_store %arg6[%c0_25, %c0_26], %40 {strides = array<i32>} : memref<16x1xf32, #tpu.memory_space<vmem>>, vector<16x1xf32>,
    } else {
    }
    return
  }
  func.func @transform_0(%arg0: i32, %arg1: i32) -> (i32, i32) {
    %c0_i32 = arith.constant 0 : i32
    %c0_i32_0 = arith.constant 0 : i32
    return %arg0, %c0_i32 : i32, i32
  }
  func.func @transform_1(%arg0: i32, %arg1: i32) -> (i32, i32) {
    %c0_i32 = arith.constant 0 : i32
    %c0_i32_0 = arith.constant 0 : i32
    return %c0_i32, %arg1 : i32, i32
  }
  func.func @transform_2(%arg0: i32, %arg1: i32) -> (i32, i32) {
    %c0_i32 = arith.constant 0 : i32
    %c0_i32_0 = arith.constant 0 : i32
    return %c0_i32, %arg1 : i32, i32
  }
  func.func @transform_3(%arg0: i32, %arg1: i32) -> (i32, i32) {
    %c0_i32 = arith.constant 0 : i32
    return %arg0, %arg1 : i32, i32
  }
  func.func @transform_4(%arg0: i32, %arg1: i32) -> (i32, i32) {
    %c0_i32 = arith.constant 0 : i32
    %c0_i32_0 = arith.constant 0 : i32
    return %arg0, %c0_i32 : i32, i32
  }
}

</mosaic_0001>

<bundles_post_ra>
// kernel: tpu_custom_call.1
= control target key start
LH: loop header
LB: loop body
LE: loop exit
PB: predicated region body
PF: predicated region fallthrough
CT: control target
= control target key end

     0   :  { %10 = vsyncpa [#allocation5], 0  ;;  %s396_s0 = inlined_call_operand.hbm [shape: bf16[16,32], index: 0, kind: input, shape index: {}]   ;;  %s397_s1 = inlined_call_operand.hbm [shape: bf16[32,128], index: 1, kind: input, shape index: {}]   ;;  %s398_s2 = inlined_call_operand.vmem [shape: f32[1,128], index: 2, kind: input, shape index: {}]   ;;  %s399_s3 = inlined_call_operand.hbm [shape: f32[16,128], index: 3, kind: output, shape index: {0}]   ;;  %s400_s4 = inlined_call_operand.vmem [shape: f32[16,1], index: 4, kind: output, shape index: {1}]  }
   0x1   :  { %11 = vsyncpa [#allocation8], 0 }
   0x2   :  { %12 = vsyncpa [#allocation6], 0  ;;  %s332_s15 = smov [#allocation4]  }
   0x3   :  { %s18_s16 = sshll.u32 %s332_s15, 4  ;;  %s19_s16 = int_to_ptr.vmem [resolvable:$true] %s18_s16 }
   0x4   :  { %s274_s17 = scalar_lea.vmem %s19_s16, 128  ;;  %p279_p1 = scmp.lt.s32.totalorder %s19_s16, %s19_s16 }
   0x5   :  { %p275_p0 = scmp.ne.s32.totalorder %s19_s16, %s274_s17  ;;  %p280_p2 = scmp.lt.s32.totalorder %s274_s17, %s274_s17 }
   0x7   :  { %p281_p3 = por %p280_p2, %p279_p1 }
   0x9   :  { %p282_p4 = pnand %p281_p3, %p275_p0 }
   0xb   :  { %285 = shalt.err (!%p282_p4)
}
   0xc   :  { %s333_s18 = smov 64   ;;  %s334_s19 = smov 4  }
   0xd   :  { %24 = dma.hbm_to_vmem [thread:$0]  %s396_s0, 128, %s19_s16, [#allocation5], %s333_s18, %s333_s18, %s334_s19  }
   0xe   :  { %s335_s22 = smov [#allocation7]  }
   0xf   :  { %s30_s23 = sshll.u32 %s335_s22, 4  ;;  %s31_s23 = int_to_ptr.vmem [resolvable:$true] %s30_s23 }
  0x10   :  { %s294_s24 = scalar_lea.vmem %s31_s23, 256  ;;  %p299_p6 = scmp.lt.s32.totalorder %s31_s23, %s31_s23 }
  0x11   :  { %p295_p5 = scmp.ne.s32.totalorder %s31_s23, %s294_s24  ;;  %p300_p7 = scmp.lt.s32.totalorder %s294_s24, %s294_s24 }
  0x13   :  { %p301_p8 = por %p300_p7, %p299_p6 }
  0x15   :  { %p302_p9 = pnand %p301_p8, %p295_p5 }
  0x17   :  { %305 = shalt.err (!%p302_p9)
}
  0x18   :  { %36 = dma.hbm_to_vmem [thread:$0]  %s397_s1, 256, %s31_s23, [#allocation8], %s333_s18, %s333_s18, %s334_s19  }
  0x19   :  { %326 = dma.done.wait [#allocation5], 128  }
  0x1a   :  { %327 = vsyncadd [#allocation5], 4294967168 }
  0x1b   :  { %328 = dma.done.wait [#allocation8], 256  }
  0x1c   :  { %329 = vsyncadd [#allocation8], 4294967040  ;;  %vm50_vm0 = vcmask 7168   ;;  %v336_v0 = vmov 0.0   ;;  %vm337_vm1 = vmmov 0   ;;  %v251_v1 = vld [vmem:[#allocation7 + $0x8] sm:$0xff]   ;;  %v133_v5 = vlaneseq }
  0x1d   :  { %53 = vst.msk [vmem:[#allocation3] sm:$0xff] %vm50_vm0, %v336_v0  ;;  %54 = vst.msk [vmem:[#allocation3 + $0x8] sm:$0xff] %vm50_vm0, %v336_v0  ;;  %230 = vmatprep.subr.bf16.mxu0 %v336_v0  ;;  %234 = vmatprep.mubr.msk.bf16.mxu0 %vm337_vm1, %v336_v0  ;;  %v252_v2 = vld [vmem:[#allocation7] sm:$0xff]   ;;  %v253_v3 = vld [vmem:[#allocation4] sm:$0xff]   ;;  %vm85_vm2 = vcmask 261120   ;;  %v338_v4 = vmov -inf  }
  0x1e   :  { %231 = vmatpush3.bf16.msra.mxu0 %v251_v1  ;;  %51 = vst.msk [vmem:[#allocation2] sm:$0xff] %vm50_vm0, %v338_v4  ;;  %52 = vst.msk [vmem:[#allocation2 + $0x8] sm:$0xff] %vm50_vm0, %v338_v4  ;;  %v134_v6 = vand.u32 127, %v133_v5  ;;  %v222_v7 = vld [vmem:[%s398_s2] ss:$0 sm:$0xff]  ;;  %v339_v16 = vmov 0  }
  0x1f   :  { %232 = vmatprep.subr.bf16.mxu0 %v336_v0  ;;  %249 = vset.pattern.permute.xlu1 %v339_v16  ;;  %s340_s2 = smov [#allocation9]  }
  0x20   :  { %vm137_vm3 = vcmp.lt.s32.totalorder %v134_v6, 16  ;;  %250 = vset.pattern.permute.xlu0 %v339_v16  ;;  %s205_s27 = sshll.u32 %s340_s2, 4  ;;  %s206_s27 = int_to_ptr.vmem [resolvable:$true] %s205_s27 }
  0x21   :  { %s306_s28 = scalar_lea.vmem %s206_s27, 256  ;;  %p311_p11 = scmp.lt.s32.totalorder %s206_s27, %s206_s27 }
  0x22   :  { %233 = vmatpush3.bf16.msra.mxu0 %v252_v2  ;;  %p307_p10 = scmp.ne.s32.totalorder %s206_s27, %s306_s28  ;;  %p312_p12 = scmp.lt.s32.totalorder %s306_s28, %s306_s28 }
  0x24   :  { %p313_p13 = por %p312_p12, %p311_p11 }
  0x25   :  { %235 = vmatmul.mubr.msk.bf16.vlgmr.msra.gmra.mxu0 %vm85_vm2, %v253_v3  ;;  %v140_v17 = vld [vmem:[#allocation2] sm:$0xff]  ;;  %v141_v20 = vld [vmem:[#allocation2 + $0x8] sm:$0xff] }
  0x26   :  { %p314_p0 = pnand %p313_p13, %p307_p10 }
  0xe5   :  { %v123_v8 = vpop.f32.mrf.mxu0 }
  0xe6   :  { %v124_v9 = vadd.f32 %v222_v7, %v123_v8 }
  0xe7   :  { %v236_v10 = vpop.f32.mrf.mxu0 }
  0xe8   :  { %130 = vst [vmem:[#allocation9] sm:$0xff] %v124_v9  ;;  %v138_v11 = vsel %vm137_vm3, %v124_v9, -1e+30 }
  0xe9   :  { %142 = vmax.xlane.f32.xlu0 %v138_v11  ;;  %v126_v12 = vpop.f32.mrf.mxu0 }
  0xea   :  { %v127_v13 = vadd.f32 %v222_v7, %v126_v12 }
  0xeb   :  { %v237_v14 = vpop.f32.mrf.mxu0 }
  0xec   :  { %131 = vst [vmem:[#allocation9 + $0x8] sm:$0xff] %v127_v13  ;;  %v139_v15 = vsel %vm137_vm3, %v127_v13, -1e+30 }
  0xed   :  { %144 = vmax.xlane.f32.xlu0 %v139_v15 }
 0x172   :  { %v143_v18 = vpop.xlane.xlu0 %142 }
 0x173   :  { %v146_v19 = vmax.f32 %v140_v17, %v143_v18 }
 0x175   :  { %v150_v21 = vsub.f32 %v140_v17, %v146_v19  ;;  %183 = vst.msk [vmem:[#allocation2] sm:$0xff] %vm50_vm0, %v146_v19  ;;  %160 = vperm.xlu1 %249, %v146_v19  }
 0x176   :  { %v145_v22 = vpop.xlane.xlu0 %144 }
 0x177   :  { %v147_v23 = vmax.f32 %v141_v20, %v145_v22 }
 0x179   :  { %v151_v24 = vsub.f32 %v141_v20, %v147_v23  ;;  %184 = vst.msk [vmem:[#allocation2 + $0x8] sm:$0xff] %vm50_vm0, %v147_v23  ;;  %165 = vperm.xlu1 %249, %v147_v23  }
 0x1f0   :  { %v161_v25 = vpop.permute.xlu1 %160 }
 0x1f1   :  { %v168_v26 = vsub.f32 %v138_v11, %v161_v25 }
 0x1f3   :  { %v170_v27 = vmul.f32 1.442695, %v168_v26 }
 0x1f4   :  { %v166_v28 = vpop.permute.xlu1 %165 }
 0x1f5   :  { %254 = vpow2.f32 %v170_v27  ;;  %v169_v29 = vsub.f32 %v139_v15, %v166_v28 }
 0x1f7   :  { %v172_v30 = vmul.f32 1.442695, %v169_v29 }
 0x1f9   :  { %256 = vpow2.f32 %v172_v30 }
 0x202   :  { %v255_v31 = vpop.eup %254 }
 0x203   :  { %174 = vadd.xlane.f32.xlu0 %v255_v31 }
 0x206   :  { %v257_v32 = vpop.eup %256 }
 0x207   :  { %176 = vadd.xlane.f32.xlu1 %v257_v32 }
 0x208   :  { %317 = shalt.err (!%p314_p0)
}
 0x209   :  { %s341_s29 = smov 128   ;;  %s342_s30 = smov 8   ;;  %v152_v33 = vmul.f32 1.442695, %v150_v21  ;;  %v154_v34 = vmul.f32 1.442695, %v151_v24 }
 0x20a   :  { %211 = dma.vmem_to_hbm [thread:$0]  %s206_s27, 256, %s399_s3, [#allocation6], %s341_s29, %s341_s29, %s342_s30   ;;  %v148_v36 = vld [vmem:[#allocation3] sm:$0xff]  ;;  %v149_v40 = vld [vmem:[#allocation3 + $0x8] sm:$0xff]  ;;  %v188_v49 = vld [vmem:[#allocation2] sm:$0xff] }
 0x20b   :  { %258 = vpow2.f32 %v152_v33  ;;  %v189_v53 = vld [vmem:[#allocation2 + $0x8] sm:$0xff] }
 0x20c   :  { %260 = vpow2.f32 %v154_v34 }
 0x218   :  { %v259_v35 = vpop.eup %258 }
 0x219   :  { %v156_v37 = vmul.f32 %v259_v35, %v148_v36  ;;  %v261_v38 = vpop.eup %260 }
 0x21a   :  { %v157_v42 = vmul.f32 %v261_v38, %v149_v40 }
 0x28c   :  { %v175_v39 = vpop.xlane.xlu0 %174 }
 0x28d   :  { %v178_v41 = vadd.f32 %v175_v39, %v156_v37 }
 0x28f   :  { %181 = vst.msk [vmem:[#allocation3] sm:$0xff] %vm50_vm0, %v178_v41 }
 0x290   :  { %v177_v43 = vpop.xlane.xlu1 %176 }
 0x291   :  { %v179_v44 = vadd.f32 %v177_v43, %v157_v42 }
 0x293   :  { %182 = vst.msk [vmem:[#allocation3 + $0x8] sm:$0xff] %vm50_vm0, %v179_v44 }
 0x296   :  { %v190_v45 = vld [vmem:[#allocation3] sm:$0xff] }
 0x297   :  { %262 = vlog2.f32 %v190_v45 }
 0x29a   :  { %v191_v46 = vld [vmem:[#allocation3 + $0x8] sm:$0xff] }
 0x29b   :  { %264 = vlog2.f32 %v191_v46 }
 0x2a4   :  { %v263_v47 = vpop.eup %262 }
 0x2a5   :  { %v193_v48 = vmul.f32 0.6931472, %v263_v47 }
 0x2a7   :  { %v196_v50 = vadd.f32 %v193_v48, %v188_v49 }
 0x2a8   :  { %v265_v51 = vpop.eup %264 }
 0x2a9   :  { %198 = vst.msk [vmem:[%s400_s4] sm:$0xff] %vm50_vm0, %v196_v50  ;;  %v195_v52 = vmul.f32 0.6931472, %v265_v51 }
 0x2ab   :  { %v197_v54 = vadd.f32 %v195_v52, %v189_v53 }
 0x2ad   :  { %199 = vst.msk [vmem:[%s400_s4 + $0x8] sm:$0xff] %vm50_vm0, %v197_v54 }
 0x2ae   :  { %330 = dma.done.wait [#allocation6], 256  }
 0x2af   :  { %331 = vsyncadd [#allocation6], 4294967040 }
 0x2b0   :  { %219 = vsyncpa [#allocation5], 1 }
 0x2b1   :  { %220 = vsyncpa [#allocation8], 1 }
 0x2b2   :  { %221 = vsyncpa [#allocation6], 1 }

</bundles_post_ra>
